<compile_context>
chip_gen: v6e
topology: v6e:2x2x1
jax: 0.10.0
libtpu: 0.0.40
codegen_flags: <defaults>
</compile_context>

<pallas_src>
import functools

import jax
import jax.numpy as jnp
from jax.experimental import pallas as pl
from jax.experimental.pallas import tpu as pltpu


def _round_up(a, m):
    return -(-a // m) * m


def _mf_kernel(batch_ref, x_ref, w1_ref, w2_ref, bias_ref, out_ref, acc_ref,
               *, hidden, t_pad, pool_dtype):
    gk = pl.program_id(0)                       # node-tile index (reduction axis)
    b_pad = acc_ref.shape[0]
    tile_n = x_ref.shape[0]

    @pl.when(gk == 0)
    def _():
        acc_ref[...] = jnp.zeros_like(acc_ref)

    # One-hot pooling block for this node tile, built from the resident batch ids.
    bids = batch_ref[pl.ds(gk, 1), :]                                   # [1, tile_n] int32
    graph_ids = jax.lax.broadcasted_iota(jnp.int32, (b_pad, tile_n), 0)
    onehot = (bids == graph_ids).astype(pool_dtype)                     # single cast, exact 0/1

    # global_add_pool as an MXU matmul, f32 accumulation (counts are exact).
    xb = x_ref[...].astype(pool_dtype)
    acc_ref[...] += jnp.dot(onehot, xb, preferred_element_type=jnp.float32)

    # MLP epilogue once all node tiles have been accumulated (runs exactly once).
    @pl.when(gk == pl.num_programs(0) - 1)
    def _():
        pooled = acc_ref[...]                                           # [b_pad, F] f32 (BN folded into W1/b1)
        b1 = bias_ref[0:1, 0:hidden]
        b2 = bias_ref[1:2, 0:t_pad]
        h1 = jnp.dot(pooled, w1_ref[...], preferred_element_type=jnp.float32) + b1
        h1 = jnp.maximum(h1, 0.0)              # ReLU (Dropout = identity in eval)
        out = jnp.dot(h1, w2_ref[...], preferred_element_type=jnp.float32) + b2
        out_ref[...] = jnp.maximum(out, 0.0)   # final ReLU


def molecular_fingerprint_forward(x, batch, num_graphs, params,
                                  *, tile_n=512, binary_features=True):
    """Pallas forward: global_add_pool + (BN -> Linear -> ReLU -> Dropout -> Linear -> ReLU).

    binary_features=True (fingerprint bits in {0,1}) streams the pooling matmul in
    bf16 (exact for 0/1 data); set False to keep the pooling path fully in f32.
    """
    gamma, beta, mean, var, w1, b1, w2, b2 = params
    eps = 1e-5

    # --- Host-side folds (done once per parameter set) -----------------------------------
    scale = gamma * jax.lax.rsqrt(var + eps)                    # [F]
    w1_f = (scale[:, None] * w1).astype(jnp.float32)            # [F, H]  (BN folded)
    b1_f = (b1 + (beta - mean * scale) @ w1).astype(jnp.float32)  # [H]

    hidden = w1.shape[1]
    t = w2.shape[1]
    t_pad = _round_up(t, 128)                                   # lane-dense output slab
    w2_p = jnp.zeros((hidden, t_pad), jnp.float32).at[:, :t].set(w2.astype(jnp.float32))

    pw = max(hidden, t_pad)
    bias = jnp.zeros((2, pw), jnp.float32)
    bias = bias.at[0, :hidden].set(b1_f)
    bias = bias.at[1, :t].set(b2.astype(jnp.float32))

    # --- Grid layout: all graphs in one tile, large node tiles ---------------------------
    n, f = x.shape
    b_pad = _round_up(max(int(num_graphs), 1), 8)               # all graphs resident in VMEM

    if n <= tile_n:
        tile_n_eff = _round_up(n, 8)                            # grid collapses to (1,)
    else:
        tile_n_eff = _round_up(tile_n, 128)                     # keep pl.ds-friendly alignment
    n_pad = _round_up(n, tile_n_eff)

    if n_pad != n:
        x = jnp.pad(x, ((0, n_pad - n), (0, 0)))
        # sentinel >= b_pad: padded nodes never match any graph id
        batch = jnp.pad(batch, (0, n_pad - n), constant_values=b_pad)
    grid_n = n_pad // tile_n_eff
    batch2 = batch.astype(jnp.int32).reshape(grid_n, tile_n_eff)  # fully VMEM-resident ids

    pool_dtype = jnp.bfloat16 if binary_features else jnp.float32
    kernel = functools.partial(_mf_kernel, hidden=hidden, t_pad=t_pad,
                               pool_dtype=pool_dtype)

    out = pl.pallas_call(
        kernel,
        out_shape=jax.ShapeDtypeStruct((b_pad, t_pad), jnp.float32),
        grid_spec=pltpu.PrefetchScalarGridSpec(
            num_scalar_prefetch=0,
            grid=(grid_n,),
            in_specs=[
                pl.BlockSpec((grid_n, tile_n_eff), lambda gk: (0, 0)),   # batch ids (resident, 1 DMA)
                pl.BlockSpec((tile_n_eff, f), lambda gk: (gk, 0)),       # node features (read once)
                pl.BlockSpec((f, hidden), lambda gk: (0, 0)),            # BN-folded W1
                pl.BlockSpec((hidden, t_pad), lambda gk: (0, 0)),        # padded W2
                pl.BlockSpec((2, pw), lambda gk: (0, 0)),                # packed biases
            ],
            out_specs=pl.BlockSpec((b_pad, t_pad), lambda gk: (0, 0)),
            scratch_shapes=[pltpu.VMEM((b_pad, f), jnp.float32)],        # pooled accumulator
        ),
        compiler_params=pltpu.CompilerParams(
            dimension_semantics=("arbitrary",),                          # single reduction axis
        ),
    )(batch2, x, w1_f, w2_p, bias)

    return out[:num_graphs, :t]


def reference_forward(x, batch, num_graphs, params):
    """Pure-JAX reference (eval-mode module semantics)."""
    gamma, beta, mean, var, w1, b1, w2, b2 = params
    pooled = jax.ops.segment_sum(x, batch, num_segments=num_graphs)
    xb = (pooled - mean) * jax.lax.rsqrt(var + 1e-5) * gamma + beta
    h1 = jax.nn.relu(xb @ w1 + b1)
    return jax.nn.relu(h1 @ w2 + b2)


if __name__ == "__main__":
    key = jax.random.PRNGKey(0)

    # Small, module-consistent shapes (fingerprint-style binary node features).
    num_nodes = 200          # fits one node tile -> grid collapses to a single step
    num_graphs = 12          # pads to 16 resident graph rows
    dim_features = 256       # data.x feature width (fingerprint length)
    hidden_dim = 128         # config['hidden_units']
    dim_target = 16

    (k_x, k_b, k_g, k_be, k_m, k_v, k_w1, k_w2) = jax.random.split(key, 8)

    # data.x.float(): binary fingerprint bits (exactly representable in bf16).
    x = (jax.random.uniform(k_x, (num_nodes, dim_features)) < 0.3).astype(jnp.float32)
    # data.batch: graph assignment per node (unsorted, random).
    batch = jax.random.randint(k_b, (num_nodes,), 0, num_graphs).astype(jnp.int32)

    # BatchNorm1d(dim_features): eval-mode running stats + affine params.
    gamma = 1.0 + 0.1 * jax.random.uniform(k_g, (dim_features,), dtype=jnp.float32)
    beta = 0.1 * jax.random.normal(k_be, (dim_features,), jnp.float32)
    mean = 0.1 * jax.random.normal(k_m, (dim_features,), jnp.float32)
    var = 1.0 + 0.05 * jax.random.uniform(k_v, (dim_features,), dtype=jnp.float32)

    # Linear layers stored as [in, out] (PyTorch nn.Linear weight is [out, in] -> transpose).
    def linear_init(k, fan_in, fan_out):
        bound = 1.0 / (fan_in ** 0.5)
        kw, kb = jax.random.split(k)
        w = jax.random.uniform(kw, (fan_in, fan_out), minval=-bound, maxval=bound,
                               dtype=jnp.float32)
        b = jax.random.uniform(kb, (fan_out,), minval=-bound, maxval=bound,
                               dtype=jnp.float32)
        return w, b

    w1, b1 = linear_init(k_w1, dim_features, hidden_dim)
    w2, b2 = linear_init(k_w2, hidden_dim, dim_target)

    params = (gamma, beta, mean, var, w1, b1, w2, b2)

    # --- Pallas kernel run -----------------------------------------------------------------
    out = molecular_fingerprint_forward(x, batch, num_graphs, params)
    out = jax.block_until_ready(out)

    # --- Correctness check against pure-JAX reference ---------------------------------------
    ref = jax.block_until_ready(reference_forward(x, batch, num_graphs, params))
    assert out.shape == (num_graphs, dim_target)
    assert jnp.allclose(out, ref, atol=1e-3, rtol=1e-3), "Pallas output mismatch vs reference"

    print("KERNEL_OK")
</pallas_src>

<mosaic_0001>
module attributes {stable_mosaic.version = 11 : i64} {
  func.func @_mf_kernel(%arg0: i32, %arg1: memref<1x200xi32, #tpu.memory_space<vmem>>, %arg2: memref<200x256xf32, #tpu.memory_space<vmem>>, %arg3: memref<256x128xf32, #tpu.memory_space<vmem>>, %arg4: memref<128x128xf32, #tpu.memory_space<vmem>>, %arg5: memref<2x128xf32, #tpu.memory_space<vmem>>, %arg6: memref<16x128xf32, #tpu.memory_space<vmem>>, %arg7: memref<16x256xf32, #tpu.memory_space<vmem>>) attributes {dimension_semantics = [#tpu.dimension_semantics<arbitrary>], iteration_bounds = array<i64: 1>, scalar_prefetch = 0 : i64, scratch_operands = 1 : i64, tpu.core_type = #tpu.core_type<tc>, window_params = [{pipeline_mode = #tpu.pipeline_mode<synchronous>, transform_indices = @transform_0, window_bounds = array<i64: 1, 200>}, {transform_indices = @transform_1, window_bounds = array<i64: 200, 256>}, {pipeline_mode = #tpu.pipeline_mode<synchronous>, transform_indices = @transform_2, window_bounds = array<i64: 256, 128>}, {pipeline_mode = #tpu.pipeline_mode<synchronous>, transform_indices = @transform_3, window_bounds = array<i64: 128, 128>}, {pipeline_mode = #tpu.pipeline_mode<synchronous>, transform_indices = @transform_4, window_bounds = array<i64: 2, 128>}, {pipeline_mode = #tpu.pipeline_mode<synchronous>, transform_indices = @transform_5, window_bounds = array<i64: 16, 128>}]} {
    %c0_i32 = arith.constant 0 : i32
    %0 = arith.cmpi eq, %arg0, %c0_i32 : i32
    %1 = arith.extui %0 : i1 to i32
    %c0_i32_0 = arith.constant 0 : i32
    %2 = arith.cmpi ne, %1, %c0_i32_0 : i32
    scf.if %2 {
      %cst_9 = arith.constant 0.000000e+00 : f32
      %20 = vector.broadcast %cst_9 : f32 to vector<16x256xf32>
      %c0_10 = arith.constant 0 : index
      %c0_11 = arith.constant 0 : index
      %21 = vector.load %arg7[%c0_10, %c0_11] : memref<16x256xf32, #tpu.memory_space<vmem>>, vector<16x256xf32>
      tpu.vector_store %arg7[%c0_10, %c0_11], %20 {strides = array<i32>} : memref<16x256xf32, #tpu.memory_space<vmem>>, vector<16x256xf32>,
    } else {
    }
    %3 = arith.index_cast %arg0 : i32 to index
    %c0 = arith.constant 0 : index
    %4 = vector.load %arg1[%3, %c0] : memref<1x200xi32, #tpu.memory_space<vmem>>, vector<1x200xi32>
    %5 = tpu.iota {dimensions = array<i32: 0>} : vector<16x200xi32>
    %6 = vector.broadcast %4 : vector<1x200xi32> to vector<16x200xi32>
    %7 = arith.cmpi eq, %6, %5 : vector<16x200xi32>
    %8 = arith.extui %7 : vector<16x200xi1> to vector<16x200xi32>
    %9 = arith.sitofp %8 : vector<16x200xi32> to vector<16x200xf32>
    %10 = arith.truncf %9 : vector<16x200xf32> to vector<16x200xbf16>
    %c0_1 = arith.constant 0 : index
    %c0_2 = arith.constant 0 : index
    %11 = vector.load %arg2[%c0_1, %c0_2] : memref<200x256xf32, #tpu.memory_space<vmem>>, vector<200x256xf32>
    %12 = arith.truncf %11 : vector<200x256xf32> to vector<200x256xbf16>
    %c0_3 = arith.constant 0 : index
    %c0_4 = arith.constant 0 : index
    %13 = vector.load %arg7[%c0_3, %c0_4] : memref<16x256xf32, #tpu.memory_space<vmem>>, vector<16x256xf32>
    %cst = arith.constant dense<0.000000e+00> : vector<16x256xf32>
    %14 = tpu.matmul %10, %12, %cst {dimension_numbers = #tpu.dot_dimension_numbers<[1], [0], [0], [1], [0, 0, 1, 1], [], []>} : vector<16x200xbf16>, vector<200x256xbf16>, vector<16x256xf32> -> vector<16x256xf32>
    %15 = arith.addf %13, %14 : vector<16x256xf32>
    %c0_5 = arith.constant 0 : index
    %c0_6 = arith.constant 0 : index
    %16 = vector.load %arg7[%c0_5, %c0_6] : memref<16x256xf32, #tpu.memory_space<vmem>>, vector<16x256xf32>
    tpu.vector_store %arg7[%c0_5, %c0_6], %15 {strides = array<i32>} : memref<16x256xf32, #tpu.memory_space<vmem>>, vector<16x256xf32>,
    %c0_i32_7 = arith.constant 0 : i32
    %17 = arith.cmpi eq, %arg0, %c0_i32_7 : i32
    %18 = arith.extui %17 : i1 to i32
    %c0_i32_8 = arith.constant 0 : i32
    %19 = arith.cmpi ne, %18, %c0_i32_8 : i32
    scf.if %19 {
      %c0_9 = arith.constant 0 : index
      %c0_10 = arith.constant 0 : index
      %20 = vector.load %arg7[%c0_9, %c0_10] : memref<16x256xf32, #tpu.memory_space<vmem>>, vector<16x256xf32>
      %c0_11 = arith.constant 0 : index
      %c0_12 = arith.constant 0 : index
      %21 = vector.load %arg5[%c0_11, %c0_12] : memref<2x128xf32, #tpu.memory_space<vmem>>, vector<1x128xf32>
      %c1 = arith.constant 1 : index
      %c0_13 = arith.constant 0 : index
      %22 = vector.load %arg5[%c1, %c0_13] : memref<2x128xf32, #tpu.memory_space<vmem>>, vector<1x128xf32>
      %c0_14 = arith.constant 0 : index
      %c0_15 = arith.constant 0 : index
      %23 = vector.load %arg3[%c0_14, %c0_15] : memref<256x128xf32, #tpu.memory_space<vmem>>, vector<256x128xf32>
      %cst_16 = arith.constant dense<0.000000e+00> : vector<16x128xf32>
      %24 = tpu.matmul %20, %23, %cst_16 {dimension_numbers = #tpu.dot_dimension_numbers<[1], [0], [0], [1], [0, 0, 1, 1], [], []>} : vector<16x256xf32>, vector<256x128xf32>, vector<16x128xf32> -> vector<16x128xf32>
      %25 = vector.broadcast %21 : vector<1x128xf32> to vector<16x128xf32>
      %26 = arith.addf %24, %25 : vector<16x128xf32>
      %cst_17 = arith.constant 0.000000e+00 : f32
      %27 = vector.broadcast %cst_17 : f32 to vector<16x128xf32>
      %28 = arith.maximumf %26, %27 : vector<16x128xf32>
      %c0_18 = arith.constant 0 : index
      %c0_19 = arith.constant 0 : index
      %29 = vector.load %arg4[%c0_18, %c0_19] : memref<128x128xf32, #tpu.memory_space<vmem>>, vector<128x128xf32>
      %cst_20 = arith.constant dense<0.000000e+00> : vector<16x128xf32>
      %30 = tpu.matmul %28, %29, %cst_20 {dimension_numbers = #tpu.dot_dimension_numbers<[1], [0], [0], [1], [0, 0, 1, 1], [], []>} : vector<16x128xf32>, vector<128x128xf32>, vector<16x128xf32> -> vector<16x128xf32>
      %31 = vector.broadcast %22 : vector<1x128xf32> to vector<16x128xf32>
      %32 = arith.addf %30, %31 : vector<16x128xf32>
      %cst_21 = arith.constant 0.000000e+00 : f32
      %33 = vector.broadcast %cst_21 : f32 to vector<16x128xf32>
      %34 = arith.maximumf %32, %33 : vector<16x128xf32>
      %c0_22 = arith.constant 0 : index
      %c0_23 = arith.constant 0 : index
      %35 = vector.load %arg6[%c0_22, %c0_23] : memref<16x128xf32, #tpu.memory_space<vmem>>, vector<16x128xf32>
      tpu.vector_store %arg6[%c0_22, %c0_23], %34 {strides = array<i32>} : memref<16x128xf32, #tpu.memory_space<vmem>>, vector<16x128xf32>,
    } else {
    }
    return
  }
  func.func @transform_0(%arg0: i32) -> (i32, i32) {
    %c0_i32 = arith.constant 0 : i32
    %c0_i32_0 = arith.constant 0 : i32
    %c0_i32_1 = arith.constant 0 : i32
    return %c0_i32, %c0_i32_0 : i32, i32
  }
  func.func @transform_1(%arg0: i32) -> (i32, i32) {
    %c0_i32 = arith.constant 0 : i32
    %c0_i32_0 = arith.constant 0 : i32
    return %arg0, %c0_i32 : i32, i32
  }
  func.func @transform_2(%arg0: i32) -> (i32, i32) {
    %c0_i32 = arith.constant 0 : i32
    %c0_i32_0 = arith.constant 0 : i32
    %c0_i32_1 = arith.constant 0 : i32
    return %c0_i32, %c0_i32_0 : i32, i32
  }
  func.func @transform_3(%arg0: i32) -> (i32, i32) {
    %c0_i32 = arith.constant 0 : i32
    %c0_i32_0 = arith.constant 0 : i32
    %c0_i32_1 = arith.constant 0 : i32
    return %c0_i32, %c0_i32_0 : i32, i32
  }
  func.func @transform_4(%arg0: i32) -> (i32, i32) {
    %c0_i32 = arith.constant 0 : i32
    %c0_i32_0 = arith.constant 0 : i32
    %c0_i32_1 = arith.constant 0 : i32
    return %c0_i32, %c0_i32_0 : i32, i32
  }
  func.func @transform_5(%arg0: i32) -> (i32, i32) {
    %c0_i32 = arith.constant 0 : i32
    %c0_i32_0 = arith.constant 0 : i32
    %c0_i32_1 = arith.constant 0 : i32
    return %c0_i32, %c0_i32_0 : i32, i32
  }
}

</mosaic_0001>

<bundles_post_ra>
// kernel: tpu_custom_call.1
= control target key start
LH: loop header
LB: loop body
LE: loop exit
PB: predicated region body
PF: predicated region fallthrough
CT: control target
= control target key end

     0   :  { %10 = vsyncpa [#allocation4], 0  ;;  %s799_s0 = inlined_call_operand.hbm [shape: s32[1,200], index: 0, kind: input, shape index: {}]   ;;  %s800_s1 = inlined_call_operand.hbm [shape: f32[200,256], index: 1, kind: input, shape index: {}]   ;;  %s801_s2 = inlined_call_operand.hbm [shape: f32[256,128], index: 2, kind: input, shape index: {}]   ;;  %s802_s3 = inlined_call_operand.hbm [shape: f32[128,128], index: 3, kind: input, shape index: {}]   ;;  %s803_s4 = inlined_call_operand.vmem [shape: f32[2,128], index: 4, kind: input, shape index: {}]   ;;  %s804_s5 = inlined_call_operand.hbm [shape: f32[16,128], index: 5, kind: output, shape index: {}]  }
   0x1   :  { %11 = vsyncpa [#allocation7], 0 }
   0x2   :  { %12 = vsyncpa [#allocation10], 0 }
   0x3   :  { %13 = vsyncpa [#allocation5], 0  ;;  %s713_s18 = smov [#allocation6]  }
   0x4   :  { %s29_s19 = sshll.u32 %s713_s18, 4  ;;  %s30_s19 = int_to_ptr.vmem [resolvable:$true] %s29_s19 }
   0x5   :  { %s613_s20 = scalar_lea.vmem %s30_s19, 6400  ;;  %p618_p1 = scmp.lt.s32.totalorder %s30_s19, %s30_s19 }
   0x6   :  { %p614_p0 = scmp.ne.s32.totalorder %s30_s19, %s613_s20  ;;  %p619_p2 = scmp.lt.s32.totalorder %s613_s20, %s613_s20 }
   0x8   :  { %p620_p3 = por %p619_p2, %p618_p1 }
   0xa   :  { %p621_p4 = pnand %p620_p3, %p614_p0 }
   0xc   :  { %624 = shalt.err (!%p621_p4)
}
   0xd   :  { %s714_s21 = smov 256   ;;  %s715_s22 = smov 16  }
   0xe   :  { %35 = dma.hbm_to_vmem [thread:$0]  %s800_s1, 6400, %s30_s19, [#allocation7], %s714_s21, %s714_s21, %s715_s22  }
   0xf   :  { %s716_s25 = smov [#allocation3]   ;;  %s717_s27 = smov [#allocation8]  }
  0x10   :  { %s20_s26 = sshll.u32 %s716_s25, 4  ;;  %s41_s28 = sshll.u32 %s717_s27, 4  ;;  %s21_s26 = int_to_ptr.vmem [resolvable:$true] %s20_s26  ;;  %s42_s28 = int_to_ptr.vmem [resolvable:$true] %s41_s28 }
  0x11   :  { %s633_s29 = scalar_lea.vmem %s21_s26, 32  ;;  %p638_p6 = scmp.lt.s32.totalorder %s21_s26, %s21_s26 }
  0x12   :  { %p634_p5 = scmp.ne.s32.totalorder %s21_s26, %s633_s29  ;;  %p639_p7 = scmp.lt.s32.totalorder %s633_s29, %s633_s29 }
  0x14   :  { %p640_p8 = por %p639_p7, %p638_p6 }
  0x16   :  { %p641_p9 = pnand %p640_p8, %p634_p5 }
  0x18   :  { %644 = shalt.err (!%p641_p9)
}
  0x19   :  { %23 = dma.hbm_to_vmem [thread:$0]  %s799_s0, 32, %s21_s26, [#allocation4]  }
  0x1a   :  { %s653_s7 = scalar_lea.vmem %s42_s28, 4096  ;;  %p658_p11 = scmp.lt.s32.totalorder %s42_s28, %s42_s28 }
  0x1b   :  { %p654_p10 = scmp.ne.s32.totalorder %s42_s28, %s653_s7  ;;  %p659_p12 = scmp.lt.s32.totalorder %s653_s7, %s653_s7 }
  0x1d   :  { %p660_p13 = por %p659_p12, %p658_p11 }
  0x1f   :  { %p661_p0 = pnand %p660_p13, %p654_p10 }
  0x21   :  { %664 = shalt.err (!%p661_p0)
}
  0x22   :  { %s718_s1 = smov 128   ;;  %s719_s8 = smov 8  }
  0x23   :  { %47 = dma.hbm_to_vmem [thread:$0]  %s801_s2, 4096, %s42_s28, [#allocation7], %s718_s1, %s718_s1, %s719_s8  }
  0x24   :  { %s720_s11 = smov [#allocation9]  }
  0x25   :  { %s53_s12 = sshll.u32 %s720_s11, 4  ;;  %s54_s12 = int_to_ptr.vmem [resolvable:$true] %s53_s12 }
  0x26   :  { %s673_s0 = scalar_lea.vmem %s54_s12, 2048  ;;  %p678_p2 = scmp.lt.s32.totalorder %s54_s12, %s54_s12 }
  0x27   :  { %p674_p1 = scmp.ne.s32.totalorder %s54_s12, %s673_s0  ;;  %p679_p3 = scmp.lt.s32.totalorder %s673_s0, %s673_s0 }
  0x29   :  { %p680_p4 = por %p679_p3, %p678_p2 }
  0x2b   :  { %p681_p5 = pnand %p680_p4, %p674_p1 }
  0x2d   :  { %684 = shalt.err (!%p681_p5)
}
  0x2e   :  { %59 = dma.hbm_to_vmem [thread:$0]  %s802_s3, 2048, %s54_s12, [#allocation10], %s718_s1, %s718_s1, %s719_s8  }
  0x2f   :  { %705 = dma.done.wait [#allocation4], 32  }
  0x30   :  { %706 = vsyncadd [#allocation4], 4294967264 }
  0x31   :  { %707 = dma.done.wait [#allocation7], 10496  }
  0x32   :  { %708 = vsyncadd [#allocation7], 4294956800 }
  0x33   :  { %709 = dma.done.wait [#allocation10], 2048  }
  0x34   :  { %710 = vsyncadd [#allocation10], 4294965248  ;;  %v140_v0 = vld [vmem:[#allocation6 + $0xe8] sm:$0xff]  ;;  %v142_v1 = vld [vmem:[#allocation6 + $0xf8] sm:$0xff]  ;;  %v86_v17 = vlaneseq  ;;  %v721_v49 = vmov 0.0   ;;  %vm191_vm2 = vcmask 588800  }
  0x35   :  { %v139_v2 = vld [vmem:[#allocation6 + $0xe0] sm:$0xff]  ;;  %v176_v3 = vpack.c.bf16 %v142_v1, %v140_v0  ;;  %v141_v4 = vld [vmem:[#allocation6 + $0xf0] sm:$0xff]  ;;  %v136_v5 = vld [vmem:[#allocation6 + $0xc8] sm:$0xff]  ;;  %vm195_vm3 = vcmask 1043456   ;;  %s723_s17 = smov [#allocation11]  }
  0x36   :  { %v138_v6 = vld [vmem:[#allocation6 + $0xd8] sm:$0xff]  ;;  %v175_v7 = vpack.c.bf16 %v141_v4, %v139_v2  ;;  %v135_v9 = vld [vmem:[#allocation6 + $0xc0] sm:$0xff]  ;;  %v137_v10 = vld [vmem:[#allocation6 + $0xd0] sm:$0xff]  ;;  %v772_v24 = vshrl.u32 %v86_v17, 7  ;;  %s479_s18 = sshll.u32 %s723_s17, 4  ;;  %s480_s18 = int_to_ptr.vmem [resolvable:$true] %s479_s18 }
  0x37   :  { %v174_v8 = vpack.c.bf16 %v138_v6, %v136_v5  ;;  %v132_v11 = vld [vmem:[#allocation6 + $0xa8] sm:$0xff]  ;;  %202 = vmatprep.subr.bf16.mxu0 %v176_v3  ;;  %v134_v12 = vld [vmem:[#allocation6 + $0xb8] sm:$0xff]  ;;  %v173_v13 = vpack.c.bf16 %v137_v10, %v135_v9  ;;  %v131_v15 = vld [vmem:[#allocation6 + $0xa0] sm:$0xff]  ;;  %s685_s19 = scalar_lea.vmem %s480_s18, 256  ;;  %p690_p7 = scmp.lt.s32.totalorder %s480_s18, %s480_s18 }
  0x38   :  { %203 = vmatpush1.bf16.msra.mxu0 %v175_v7  ;;  %v172_v14 = vpack.c.bf16 %v134_v12, %v132_v11  ;;  %v133_v16 = vld [vmem:[#allocation6 + $0xb0] sm:$0xff]  ;;  %v128_v18 = vld [vmem:[#allocation6 + $0x88] sm:$0xff]  ;;  %v130_v19 = vld [vmem:[#allocation6 + $0x98] sm:$0xff]  ;;  %v95_v31 = vsub.s32 1, %v772_v24  ;;  %v776_v34 = vadd.s32 8, %v772_v24  ;;  %p686_p6 = scmp.ne.s32.totalorder %s480_s18, %s685_s19  ;;  %p691_p8 = scmp.lt.s32.totalorder %s685_s19, %s685_s19 }
  0x39   :  { %204 = vmatprep.subr.bf16.mxu0 %v174_v8  ;;  %v171_v20 = vpack.c.bf16 %v133_v16, %v131_v15  ;;  %v170_v21 = vpack.c.bf16 %v130_v19, %v128_v18  ;;  %v127_v22 = vld [vmem:[#allocation6 + $0x80] sm:$0xff]  ;;  %v129_v23 = vld [vmem:[#allocation6 + $0x90] sm:$0xff]  ;;  %v124_v25 = vld [vmem:[#allocation6 + $0x68] sm:$0xff] }
  0x3a   :  { %v126_v26 = vld [vmem:[#allocation6 + $0x78] sm:$0xff]  ;;  %v169_v27 = vpack.c.bf16 %v129_v23, %v127_v22  ;;  %v123_v29 = vld [vmem:[#allocation6 + $0x60] sm:$0xff]  ;;  %v125_v30 = vld [vmem:[#allocation6 + $0x70] sm:$0xff]  ;;  %p692_p9 = por %p691_p8, %p690_p7 }
  0x3b   :  { %v168_v28 = vpack.c.bf16 %v126_v26, %v124_v25  ;;  %v120_v32 = vld [vmem:[#allocation6 + $0x48] sm:$0xff]  ;;  %v122_v33 = vld [vmem:[#allocation6 + $0x58] sm:$0xff]  ;;  %v167_v35 = vpack.c.bf16 %v125_v30, %v123_v29  ;;  %v119_v36 = vld [vmem:[#allocation6 + $0x40] sm:$0xff] }
  0x3c   :  { %205 = vmatpush1.bf16.msra.mxu0 %v173_v13  ;;  %v121_v37 = vld [vmem:[#allocation6 + $0x50] sm:$0xff]  ;;  %v778_v38 = vld [vmem:[#allocation3] sm:$0x3]  ;;  %v166_v39 = vpack.c.bf16 %v122_v33, %v120_v32  ;;  %v293_v41 = vld [vmem:[#allocation8 + $0xf8] sm:$0xff]  ;;  %p693_p10 = pnand %p692_p9, %p686_p6 }
  0x3d   :  { %206 = vmatprep.subr.bf16.mxu0 %v172_v14  ;;  %v96_v40 = vrot.slane %v778_v38, %v95_v31  ;;  %v277_v42 = vld [vmem:[#allocation8 + $0x78] sm:$0xff]  ;;  %v292_v43 = vld [vmem:[#allocation8 + $0xf0] sm:$0xff]  ;;  %v118_v45 = vld [vmem:[#allocation6 + $0x38] sm:$0xff]  ;;  %503 = vmatprep.subr.mxu1 %v293_v41  ;;  %v165_v48 = vpack.c.bf16 %v121_v37, %v119_v36 }
  0x3e   :  { %v116_v44 = vld [vmem:[#allocation6 + $0x28] sm:$0xff]  ;;  %v276_v46 = vld [vmem:[#allocation8 + $0x70] sm:$0xff]  ;;  %504 = vmatpush3.msra.mxu1 %v277_v42  ;;  %v291_v47 = vld [vmem:[#allocation8 + $0xe8] sm:$0xff] }
  0x3f   :  { %vm98_vm0 = vcmp.eq.s32.totalorder %v96_v40, %v772_v24  ;;  %vm100_vm1 = vcmp.eq.s32.totalorder %v96_v40, %v776_v34  ;;  %505 = vmatprep.subr.mxu1 %v292_v43  ;;  %v275_v52 = vld [vmem:[#allocation8 + $0x68] sm:$0xff]  ;;  %v164_v53 = vpack.c.bf16 %v118_v45, %v116_v44  ;;  %v115_v54 = vld [vmem:[#allocation6 + $0x20] sm:$0xff]  ;;  %v117_v55 = vld [vmem:[#allocation6 + $0x30] sm:$0xff]  ;;  %v91_v45 = vsub.s32 0, %v772_v24 }
  0x40   :  { %207 = vmatpush1.bf16.msra.mxu0 %v171_v20  ;;  %v494_v50 = vsel %vm98_vm0, 1.0, %v721_v49  ;;  %v496_v51 = vsel %vm100_vm1, 1.0, %v721_v49  ;;  %506 = vmatpush3.msra.mxu1 %v276_v46  ;;  %v290_v57 = vld [vmem:[#allocation8 + $0xe0] sm:$0xff]  ;;  %v112_v58 = vld [vmem:[#allocation6 + $0x8] sm:$0xff]  ;;  %v114_v59 = vld [vmem:[#allocation6 + $0x18] sm:$0xff]  ;;  %v163_v62 = vpack.c.bf16 %v117_v55, %v115_v54 }
  0x41   :  { %208 = vmatprep.subr.bf16.mxu0 %v170_v21  ;;  %v110_v56 = vpack.c.bf16 %v496_v51, %v494_v50  ;;  %507 = vmatprep.subr.mxu1 %v291_v47  ;;  %v274_v60 = vld [vmem:[#allocation8 + $0x60] sm:$0xff]  ;;  %v289_v61 = vld [vmem:[#allocation8 + $0xd8] sm:$0xff]  ;;  %v162_v0 = vpack.c.bf16 %v114_v59, %v112_v58  ;;  %v111_v1 = vld [vmem:[#allocation6] sm:$0xff]  ;;  %v92_v54 = vrot.slane %v778_v38, %v91_v45 }
  0x42   :  { %508 = vmatpush3.msra.mxu1 %v275_v52  ;;  %v273_v63 = vld [vmem:[#allocation8 + $0x58] sm:$0xff]  ;;  %v113_v2 = vld [vmem:[#allocation6 + $0x10] sm:$0xff]  ;;  %v288_v3 = vld [vmem:[#allocation8 + $0xd0] sm:$0xff] }
  0x43   :  { %498 = vmatprep.mubr.msk.bf16.mxu0 %vm191_vm2, %v110_v56  ;;  %509 = vmatprep.subr.mxu1 %v290_v57  ;;  %v160_v4 = vld [vmem:[#allocation6 + $0x188] sm:$0xff]  ;;  %v159_v5 = vld [vmem:[#allocation6 + $0x180] sm:$0xff]  ;;  %v287_v7 = vld [vmem:[#allocation8 + $0xc8] sm:$0xff]  ;;  %v161_v8 = vpack.c.bf16 %v113_v2, %v111_v1  ;;  %vm97_vm4 = vcmp.eq.s32.totalorder %v92_v54, %v772_v24  ;;  %vm99_vm5 = vcmp.eq.s32.totalorder %v92_v54, %v776_v34  ;;  %v722_v56 = vmov 1.0|1.0  }
  0x44   :  { %209 = vmatpush1.bf16.msra.mxu0 %v169_v27  ;;  %510 = vmatpush3.msra.mxu1 %v274_v60  ;;  %v272_v6 = vld [vmem:[#allocation8 + $0x50] sm:$0xff]  ;;  %v271_v9 = vld [vmem:[#allocation8 + $0x48] sm:$0xff]  ;;  %v186_v10 = vpack.c.bf16 %v160_v4, %v160_v4  ;;  %v185_v11 = vpack.c.bf16 %v159_v5, %v159_v5  ;;  %v286_v12 = vld [vmem:[#allocation8 + $0xc0] sm:$0xff] }
  0x45   :  { %210 = vmatprep.subr.bf16.mxu0 %v168_v28  ;;  %511 = vmatprep.subr.mxu1 %v289_v61  ;;  %v156_v13 = vld [vmem:[#allocation6 + $0x168] sm:$0xff]  ;;  %v158_v14 = vld [vmem:[#allocation6 + $0x178] sm:$0xff]  ;;  %v270_v15 = vld [vmem:[#allocation8 + $0x40] sm:$0xff] }
  0x46   :  { %512 = vmatpush3.msra.mxu1 %v273_v63  ;;  %v285_v16 = vld [vmem:[#allocation8 + $0xb8] sm:$0xff]  ;;  %v197_v18 = vsel %vm195_vm3, %v185_v11, 0  ;;  %v184_v19 = vpack.c.bf16 %v158_v14, %v156_v13  ;;  %v155_v20 = vld [vmem:[#allocation6 + $0x160] sm:$0xff]  ;;  %v157_v21 = vld [vmem:[#allocation6 + $0x170] sm:$0xff] }
  0x47   :  { %513 = vmatprep.subr.mxu1 %v288_v3  ;;  %v269_v17 = vld [vmem:[#allocation8 + $0x38] sm:$0xff]  ;;  %v284_v22 = vld [vmem:[#allocation8 + $0xb0] sm:$0xff]  ;;  %v154_v25 = vld [vmem:[#allocation6 + $0x158] sm:$0xff]  ;;  %v183_v28 = vpack.c.bf16 %v157_v21, %v155_v20 }
  0x48   :  { %211 = vmatpush1.bf16.msra.mxu0 %v167_v35  ;;  %514 = vmatpush3.msra.mxu1 %v272_v6  ;;  %v152_v23 = vld [vmem:[#allocation6 + $0x148] sm:$0xff]  ;;  %v268_v26 = vld [vmem:[#allocation8 + $0x30] sm:$0xff]  ;;  %v283_v27 = vld [vmem:[#allocation8 + $0xa8] sm:$0xff] }
  0x49   :  { %212 = vmatprep.subr.bf16.mxu0 %v166_v39  ;;  %515 = vmatprep.subr.mxu1 %v287_v7  ;;  %v267_v29 = vld [vmem:[#allocation8 + $0x28] sm:$0xff]  ;;  %v182_v30 = vpack.c.bf16 %v154_v25, %v152_v23  ;;  %v151_v31 = vld [vmem:[#allocation6 + $0x140] sm:$0xff]  ;;  %v153_v32 = vld [vmem:[#allocation6 + $0x150] sm:$0xff] }
  0x4a   :  { %516 = vmatpush3.msra.mxu1 %v271_v9  ;;  %v282_v33 = vld [vmem:[#allocation8 + $0xa0] sm:$0xff]  ;;  %v148_v35 = vld [vmem:[#allocation6 + $0x128] sm:$0xff]  ;;  %v150_v36 = vld [vmem:[#allocation6 + $0x138] sm:$0xff]  ;;  %v181_v40 = vpack.c.bf16 %v153_v32, %v151_v31 }
  0x4b   :  { %517 = vmatprep.subr.mxu1 %v286_v12  ;;  %v266_v37 = vld [vmem:[#allocation8 + $0x20] sm:$0xff]  ;;  %v281_v39 = vld [vmem:[#allocation8 + $0x98] sm:$0xff]  ;;  %v180_v42 = vpack.c.bf16 %v150_v36, %v148_v35  ;;  %v147_v43 = vld [vmem:[#allocation6 + $0x120] sm:$0xff] }
  0x4c   :  { %213 = vmatpush1.bf16.msra.mxu0 %v165_v48  ;;  %518 = vmatpush3.msra.mxu1 %v270_v15  ;;  %v265_v41 = vld [vmem:[#allocation8 + $0x18] sm:$0xff]  ;;  %v149_v44 = vld [vmem:[#allocation6 + $0x130] sm:$0xff]  ;;  %v280_v46 = vld [vmem:[#allocation8 + $0x90] sm:$0xff] }
  0x4d   :  { %214 = vmatprep.subr.bf16.mxu0 %v164_v53  ;;  %519 = vmatprep.subr.mxu1 %v285_v16  ;;  %v144_v47 = vld [vmem:[#allocation6 + $0x108] sm:$0xff]  ;;  %v146_v48 = vld [vmem:[#allocation6 + $0x118] sm:$0xff]  ;;  %v264_v49 = vld [vmem:[#allocation8 + $0x10] sm:$0xff]  ;;  %v179_v50 = vpack.c.bf16 %v149_v44, %v147_v43 }
  0x4e   :  { %520 = vmatpush3.msra.mxu1 %v269_v17  ;;  %v178_v51 = vpack.c.bf16 %v146_v48, %v144_v47  ;;  %v143_v52 = vld [vmem:[#allocation6 + $0x100] sm:$0xff]  ;;  %v145_v53 = vld [vmem:[#allocation6 + $0x110] sm:$0xff]  ;;  %vm499_vm6 = vmpackc.low %vm99_vm5, %vm97_vm4 }
  0x4f   :  { %521 = vmatprep.subr.mxu1 %v284_v22  ;;  %v177_v55 = vpack.c.bf16 %v145_v53, %v143_v52  ;;  %v279_v57 = vld [vmem:[#allocation8 + $0x88] sm:$0xff]  ;;  %v278_v59 = vld [vmem:[#allocation8 + $0x80] sm:$0xff]  ;;  %v390_v38 = vld [vmem:[#allocation9 + $0x78] sm:$0xff] }
  0x50   :  { %215 = vmatpush1.bf16.msra.mxu0 %v163_v62  ;;  %522 = vmatpush3.msra.mxu1 %v268_v26  ;;  %v263_v58 = vld [vmem:[#allocation8 + $0x8] sm:$0xff]  ;;  %v262_v60 = vld [vmem:[#allocation8] sm:$0xff]  ;;  %v389_v24 = vld [vmem:[#allocation9 + $0x70] sm:$0xff] }
  0x51   :  { %216 = vmatprep.subr.bf16.mxu0 %v162_v0  ;;  %523 = vmatprep.subr.mxu1 %v283_v27  ;;  %v388_v34 = vld [vmem:[#allocation9 + $0x68] sm:$0xff]  ;;  %v387_v1 = vld [vmem:[#allocation9 + $0x60] sm:$0xff]  ;;  %v386_v2 = vld [vmem:[#allocation9 + $0x58] sm:$0xff] }
  0x52   :  { %524 = vmatpush3.msra.mxu1 %v267_v29  ;;  %v385_v3 = vld [vmem:[#allocation9 + $0x50] sm:$0xff]  ;;  %v384_v4 = vld [vmem:[#allocation9 + $0x48] sm:$0xff]  ;;  %v383_v5 = vld [vmem:[#allocation9 + $0x40] sm:$0xff] }
  0x53   :  { %525 = vmatprep.subr.mxu1 %v282_v33  ;;  %v382_v6 = vld [vmem:[#allocation9 + $0x38] sm:$0xff]  ;;  %v381_v7 = vld [vmem:[#allocation9 + $0x30] sm:$0xff]  ;;  %v379_v9 = vld [vmem:[#allocation9 + $0x20] sm:$0xff] }
  0x54   :  { %217 = vmatpush1.bf16.msra.mxu0 %v161_v8  ;;  %526 = vmatpush3.msra.mxu1 %v266_v37  ;;  %v380_v8 = vld [vmem:[#allocation9 + $0x28] sm:$0xff]  ;;  %v377_v11 = vld [vmem:[#allocation9 + $0x10] sm:$0xff]  ;;  %v375_v13 = vld [vmem:[#allocation9] sm:$0xff] }
  0x55   :  { %497 = vmatprep.subr.msk.bf16.mxu0 %vm195_vm3, %v186_v10  ;;  %527 = vmatprep.subr.mxu1 %v281_v39  ;;  %v378_v10 = vld [vmem:[#allocation9 + $0x18] sm:$0xff]  ;;  %v376_v12 = vld [vmem:[#allocation9 + $0x8] sm:$0xff] }
  0x56   :  { %528 = vmatpush3.msra.mxu1 %v265_v41  ;;  %v501_v15 = vld [vmem:[%s803_s4] ss:$0 sm:$0xff]  ;;  %v502_v26 = vld [vmem:[%s803_s4 + $0x1] ss:$0 sm:$0xff] }
  0x57   :  { %529 = vmatprep.subr.mxu1 %v280_v46 }
  0x58   :  { %225 = vmatpush2.bf16.msra.mxu0 %v197_v18  ;;  %530 = vmatpush3.msra.mxu1 %v264_v49 }
  0x59   :  { %226 = vmatprep.subr.bf16.mxu0 %v184_v19  ;;  %531 = vmatprep.subr.mxu1 %v279_v57 }
  0x5a   :  { %532 = vmatpush3.msra.mxu1 %v263_v58 }
  0x5b   :  { %533 = vmatprep.subr.mxu1 %v278_v59 }
  0x5c   :  { %227 = vmatpush2.bf16.msra.mxu0 %v183_v28  ;;  %534 = vmatpush3.msra.mxu1 %v262_v60 }
  0x5d   :  { %228 = vmatprep.subr.bf16.mxu0 %v182_v30  ;;  %559 = vmatprep.subr.mxu1 %v390_v38 }
  0x60   :  { %229 = vmatpush2.bf16.msra.mxu0 %v181_v40 }
  0x61   :  { %230 = vmatprep.subr.bf16.mxu0 %v180_v42 }
  0x64   :  { %231 = vmatpush2.bf16.msra.mxu0 %v179_v50 }
  0x65   :  { %232 = vmatprep.subr.bf16.mxu0 %v178_v51 }
  0x68   :  { %233 = vmatpush2.bf16.msra.mxu0 %v177_v55 }
  0x6b   :  { %500 = vmatmul.mubr.msk.bf16.vlgmr.msra.gmra.mxu0 %vm499_vm6, %v722_v56 }
 0x12b   :  { %v236_v61 = vpop.f32.mrf.mxu0 }
 0x12d   :  { %v238_v62 = vpop.f32.mrf.mxu0 }
 0x12e   :  { %362 = vmatprep.mubr.f32.mxu1 %v238_v62 }
 0x12f   :  { %v240_v63 = vpop.f32.mrf.mxu0  ;;  %363 = vmatmul.mubr.f32.vlgmr.msra.gmra.mxu1 %v236_v61 }
 0x130   :  { %560 = vmatpush3.msra.mxu1 %v390_v38 }
 0x131   :  { %v242_v0 = vpop.f32.mrf.mxu0  ;;  %561 = vmatprep.subr.mxu1 %v389_v24 }
 0x132   :  { %367 = vmatprep.mubr.f32.mxu1 %v242_v0  ;;  %562 = vmatpush3.msra.mxu1 %v389_v24 }
 0x133   :  { %368 = vmatmul.mubr.f32.gmra.mxu1 %v240_v63  ;;  %563 = vmatprep.subr.mxu1 %v388_v34 }
 0x134   :  { %564 = vmatpush3.msra.mxu1 %v388_v34 }
 0x135   :  { %565 = vmatprep.subr.mxu1 %v387_v1 }
 0x136   :  { %566 = vmatpush3.msra.mxu1 %v387_v1 }
 0x137   :  { %567 = vmatprep.subr.mxu1 %v386_v2 }
 0x138   :  { %568 = vmatpush3.msra.mxu1 %v386_v2 }
 0x139   :  { %569 = vmatprep.subr.mxu1 %v385_v3 }
 0x13a   :  { %570 = vmatpush3.msra.mxu1 %v385_v3 }
 0x13b   :  { %571 = vmatprep.subr.mxu1 %v384_v4 }
 0x13c   :  { %572 = vmatpush3.msra.mxu1 %v384_v4 }
 0x13d   :  { %573 = vmatprep.subr.mxu1 %v383_v5 }
 0x13e   :  { %574 = vmatpush3.msra.mxu1 %v383_v5 }
 0x13f   :  { %575 = vmatprep.subr.mxu1 %v382_v6 }
 0x140   :  { %576 = vmatpush3.msra.mxu1 %v382_v6 }
 0x141   :  { %577 = vmatprep.subr.mxu1 %v381_v7 }
 0x142   :  { %578 = vmatpush3.msra.mxu1 %v381_v7 }
 0x143   :  { %579 = vmatprep.subr.mxu1 %v380_v8 }
 0x144   :  { %580 = vmatpush3.msra.mxu1 %v380_v8 }
 0x145   :  { %581 = vmatprep.subr.mxu1 %v379_v9 }
 0x146   :  { %582 = vmatpush3.msra.mxu1 %v379_v9 }
 0x147   :  { %583 = vmatprep.subr.mxu1 %v378_v10 }
 0x148   :  { %584 = vmatpush3.msra.mxu1 %v378_v10 }
 0x149   :  { %585 = vmatprep.subr.mxu1 %v377_v11 }
 0x14a   :  { %586 = vmatpush3.msra.mxu1 %v377_v11 }
 0x14b   :  { %587 = vmatprep.subr.mxu1 %v376_v12 }
 0x14c   :  { %588 = vmatpush3.msra.mxu1 %v376_v12 }
 0x14d   :  { %589 = vmatprep.subr.mxu1 %v375_v13 }
 0x14e   :  { %590 = vmatpush3.msra.mxu1 %v375_v13 }
 0x1ef   :  { %v535_v14 = vpop.f32.mrf.mxu1 }
 0x1f1   :  { %v536_v16 = vpop.f32.mrf.mxu1 }
 0x1f2   :  { %v537_v17 = vadd.f32 %v536_v16, %v535_v14 }
 0x1f3   :  { %v538_v18 = vpop.f32.mrf.mxu1 }
 0x1f4   :  { %v365_v19 = vadd.f32 %v537_v17, %v501_v15 }
 0x1f5   :  { %v539_v20 = vpop.f32.mrf.mxu1 }
 0x1f6   :  { %v373_v21 = vmax.f32 %v365_v19, 0.0  ;;  %v540_v22 = vadd.f32 %v539_v20, %v538_v18 }
 0x1f8   :  { %v370_v23 = vadd.f32 %v540_v22, %v501_v15  ;;  %591 = vmatprep.mubr.f32.mxu1 %v373_v21 }
 0x1fa   :  { %v374_v25 = vmax.f32 %v370_v23, 0.0 }
 0x1fc   :  { %592 = vmatmul.mubr.f32.vlgmr.msra.gmra.mxu1 %v374_v25 }
 0x2bc   :  { %v593_v27 = vpop.f32.mrf.mxu1 }
 0x2bd   :  { %v467_v28 = vadd.f32 %v593_v27, %v502_v26 }
 0x2be   :  { %v461_v29 = vpop.f32.mrf.mxu1 }
 0x2bf   :  { %v471_v30 = vmax.f32 %v467_v28, 0.0  ;;  %v462_v31 = vadd.f32 %v502_v26, %v461_v29 }
 0x2c1   :  { %473 = vst [vmem:[#allocation11 + $0x8] sm:$0xff] %v471_v30  ;;  %v470_v32 = vmax.f32 %v462_v31, 0.0 }
 0x2c3   :  { %472 = vst [vmem:[#allocation11] sm:$0xff] %v470_v32 }
 0x2c4   :  { %696 = shalt.err (!%p693_p10)
}
 0x2c5   :  { %485 = dma.vmem_to_hbm [thread:$0]  %s480_s18, 256, %s804_s5, [#allocation5], %s718_s1, %s718_s1, %s719_s8  }
 0x2c6   :  { %711 = dma.done.wait [#allocation5], 256  }
 0x2c7   :  { %712 = vsyncadd [#allocation5], 4294967040 }
 0x2c8   :  { %489 = vsyncpa [#allocation4], 1 }
 0x2c9   :  { %490 = vsyncpa [#allocation7], 1 }
 0x2ca   :  { %491 = vsyncpa [#allocation10], 1 }
 0x2cb   :  { %492 = vsyncpa [#allocation5], 1 }

</bundles_post_ra>
